<compile_context>
chip_gen: v7x
topology: tpu7x:2x2x1
jax: 0.10.0
libtpu: 0.0.40
codegen_flags: <defaults>
</compile_context>

<pallas_src>
import jax
import jax.numpy as jnp
from jax.experimental import pallas as pl
from jax.experimental.pallas import tpu as pltpu


def bn_act_kernel(x_ref, ss_ref, o_ref):
    # x_ref:  [tm, tn]  tile of the flattened [N*C, H*W] input
    # ss_ref: [tm, 2]   per-row (scale, shift) pairs (f32)
    # o_ref:  [tm, tn]
    scale = ss_ref[:, 0:1]                                   # (tm, 1) f32
    shift = ss_ref[:, 1:2]                                    # (tm, 1) f32
    y = x_ref[...].astype(jnp.float32) * scale + shift        # fused eval-BN
    o_ref[...] = jnp.maximum(y, 0.0).astype(o_ref.dtype)      # ReLU


def norm_activation(x, gamma, beta, running_mean, running_var, eps=1e-5):
    """NormActivation forward: BatchNorm2d (eval mode) -> ReLU.

    x: [N, C, H, W]; gamma / beta / running_mean / running_var: [C].
    """
    n, c, h, w = x.shape
    rows = n * c
    cols = h * w

    # Fold eval-mode BatchNorm2d into per-channel scale/shift (plain-JAX glue).
    scale = (gamma.astype(jnp.float32)
             * jax.lax.rsqrt(running_var.astype(jnp.float32) + eps))     # [C]
    shift = (beta.astype(jnp.float32)
             - running_mean.astype(jnp.float32) * scale)                 # [C]

    # Flatten to a row-per-(n, c) matrix; the reshape is free (contiguous NCHW).
    x2 = x.reshape(rows, cols)

    # Per-row (scale, shift), packed into a single [rows, 2] side input so the
    # kernel needs exactly one tiny extra DMA per row-tile.
    scale_rows = jnp.tile(scale, n)                                       # [rows]
    shift_rows = jnp.tile(shift, n)                                       # [rows]
    ss = jnp.stack([scale_rows, shift_rows], axis=1)                      # [rows, 2]

    # Tile sizes: sublane-aligned rows, lane-dense (multiple-of-128) columns.
    tm = min(pl.cdiv(rows, 8) * 8, 256)
    tn = min(pl.cdiv(cols, 128) * 128, 2048)
    grid = (pl.cdiv(rows, tm), pl.cdiv(cols, tn))   # cols innermost (fastest)

    out2 = pl.pallas_call(
        bn_act_kernel,
        out_shape=jax.ShapeDtypeStruct((rows, cols), x.dtype),
        grid_spec=pltpu.PrefetchScalarGridSpec(
            num_scalar_prefetch=0,
            grid=grid,
            in_specs=[
                pl.BlockSpec((tm, tn), lambda i, j: (i, j)),
                pl.BlockSpec((tm, 2), lambda i, j: (i, 0)),
            ],
            out_specs=pl.BlockSpec((tm, tn), lambda i, j: (i, j)),
        ),
        compiler_params=pltpu.CompilerParams(
            dimension_semantics=("parallel", "parallel"),
            vmem_limit_bytes=32 * 1024 * 1024,
        ),
    )(x2, ss)

    return out2.reshape(n, c, h, w)


if __name__ == "__main__":
    key = jax.random.PRNGKey(0)
    k_x, k_g, k_b, k_m, k_v = jax.random.split(key, 5)

    batch = 2
    channels = 4
    spatial = 16

    x = jax.random.normal(k_x, (batch, channels, spatial, spatial),
                          dtype=jnp.float32)
    # BatchNorm2d(channels) parameters / running stats (eval mode).
    gamma = 1.0 + 0.1 * jax.random.normal(k_g, (channels,), jnp.float32)
    beta = 0.1 * jax.random.normal(k_b, (channels,), jnp.float32)
    running_mean = 0.05 * jax.random.normal(k_m, (channels,), jnp.float32)
    running_var = jnp.abs(jax.random.normal(k_v, (channels,), jnp.float32)) + 0.5

    out = norm_activation(x, gamma, beta, running_mean, running_var)
    out = jax.block_until_ready(out)

    # Pure-JAX reference for correctness.
    eps = 1e-5
    ref = ((x - running_mean[None, :, None, None])
           / jnp.sqrt(running_var + eps)[None, :, None, None]
           * gamma[None, :, None, None]
           + beta[None, :, None, None])
    ref = jnp.maximum(ref, 0.0)

    assert out.shape == (batch, channels, spatial, spatial)
    assert jnp.allclose(out, ref, atol=1e-4, rtol=1e-4), "mismatch vs reference"
    print("KERNEL_OK")
</pallas_src>

<mosaic_0001>
module attributes {stable_mosaic.version = 11 : i64} {
  func.func @bn_act_kernel(%arg0: i32, %arg1: i32, %arg2: memref<8x256xf32, #tpu.memory_space<vmem>>, %arg3: memref<8x2xf32, #tpu.memory_space<vmem>>, %arg4: memref<8x256xf32, #tpu.memory_space<vmem>>) attributes {dimension_semantics = [#tpu.dimension_semantics<parallel>, #tpu.dimension_semantics<parallel>], iteration_bounds = array<i64: 1, 1>, scalar_prefetch = 0 : i64, scratch_operands = 0 : i64, tpu.core_type = #tpu.core_type<tc>, window_params = [{transform_indices = @transform_0, window_bounds = array<i64: 8, 256>}, {transform_indices = @transform_1, window_bounds = array<i64: 8, 2>}, {transform_indices = @transform_2, window_bounds = array<i64: 8, 256>}]} {
    %c0 = arith.constant 0 : index
    %c0_0 = arith.constant 0 : index
    %0 = vector.load %arg3[%c0, %c0_0] : memref<8x2xf32, #tpu.memory_space<vmem>>, vector<8x1xf32>
    %c0_1 = arith.constant 0 : index
    %c1 = arith.constant 1 : index
    %1 = vector.load %arg3[%c0_1, %c1] : memref<8x2xf32, #tpu.memory_space<vmem>>, vector<8x1xf32>
    %c0_2 = arith.constant 0 : index
    %c0_3 = arith.constant 0 : index
    %2 = vector.load %arg2[%c0_2, %c0_3] : memref<8x256xf32, #tpu.memory_space<vmem>>, vector<8x256xf32>
    %3 = vector.broadcast %0 : vector<8x1xf32> to vector<8x256xf32>
    %4 = arith.mulf %2, %3 : vector<8x256xf32>
    %5 = vector.broadcast %1 : vector<8x1xf32> to vector<8x256xf32>
    %6 = arith.addf %4, %5 : vector<8x256xf32>
    %cst = arith.constant 0.000000e+00 : f32
    %7 = vector.broadcast %cst : f32 to vector<8x256xf32>
    %8 = arith.maximumf %6, %7 : vector<8x256xf32>
    %c0_4 = arith.constant 0 : index
    %c0_5 = arith.constant 0 : index
    %9 = vector.load %arg4[%c0_4, %c0_5] : memref<8x256xf32, #tpu.memory_space<vmem>>, vector<8x256xf32>
    tpu.vector_store %arg4[%c0_4, %c0_5], %8 {strides = array<i32>} : memref<8x256xf32, #tpu.memory_space<vmem>>, vector<8x256xf32>,
    return
  }
  func.func @transform_0(%arg0: i32, %arg1: i32) -> (i32, i32) {
    %c0_i32 = arith.constant 0 : i32
    return %arg0, %arg1 : i32, i32
  }
  func.func @transform_1(%arg0: i32, %arg1: i32) -> (i32, i32) {
    %c0_i32 = arith.constant 0 : i32
    %c0_i32_0 = arith.constant 0 : i32
    return %arg0, %c0_i32 : i32, i32
  }
  func.func @transform_2(%arg0: i32, %arg1: i32) -> (i32, i32) {
    %c0_i32 = arith.constant 0 : i32
    return %arg0, %arg1 : i32, i32
  }
}

</mosaic_0001>

<bundles_post_ra>
// kernel: tpu_custom_call.1
= control target key start
LH: loop header
LB: loop body
LE: loop exit
PB: predicated region body
PF: predicated region fallthrough
CT: control target
= control target key end

     0   :  { %7 = vsyncpa [#allocation3], 0  ;;  %s159_s0 = inlined_call_operand.hbm [shape: f32[8,256], index: 0, kind: input, shape index: {}]   ;;  %s160_s1 = inlined_call_operand.vmem [shape: f32[8,2], index: 1, kind: input, shape index: {}]   ;;  %s161_s2 = inlined_call_operand.hbm [shape: f32[8,256], index: 2, kind: output, shape index: {}]  }
   0x1   :  { %8 = vsyncpa [#allocation4], 0  ;;  %s113_s9 = smov [#allocation2]   ;;  %s65_s13 = scalar_lea.hbm %s159_s0, 256 }
   0x2   :  { %s15_s10 = sshll.u32 %s113_s9, 4  ;;  %p66_p0 = scmp.ne.s32.totalorder %s159_s0, %s65_s13  ;;  %s16_s10 = int_to_ptr.vmem [resolvable:$true] %s15_s10 }
   0x3   :  { %p69_p1 = scmp.lt.u32.totalorder %s65_s13, %s159_s0 }
   0x5   :  { %p71_p2 = pnand %p69_p1, %p66_p0 }
   0x7   :  { %74 = shalt.err (!%p71_p2)
}
   0x8   :  { %s75_s18 = scalar_lea.vmem %s16_s10, 256  ;;  %p80_p4 = scmp.lt.s32.totalorder %s16_s10, %s16_s10 }
   0x9   :  { %p76_p3 = scmp.ne.s32.totalorder %s16_s10, %s75_s18  ;;  %p81_p5 = scmp.lt.s32.totalorder %s75_s18, %s75_s18 }
   0xb   :  { %p82_p6 = por %p81_p5, %p80_p4 }
   0xd   :  { %p83_p7 = pnand %p82_p6, %p76_p3 }
   0xf   :  { %86 = shalt.err (!%p83_p7)
}
  0x10   :  { %18 = dma.hbm_to_vmem [thread:$0]  %s159_s0, 256, %s16_s10, [#allocation3]  }
  0x11   :  { %109 = dma.done.wait [#allocation3], 256  }
  0x12   :  { %110 = vsyncadd [#allocation3], 4294967040  ;;  %v114_v0 = vmov 0   ;;  %v24_v1 = vld [vmem:[%s160_s1] sm:$0xff]  ;;  %v115_v2 = vmov 1   ;;  %v26_v5 = vld [vmem:[#allocation2 + $0x8] sm:$0xff] }
  0x13   :  { %63 = vset.pattern.permute.xlu0 %v114_v0  ;;  %v25_v4 = vld [vmem:[#allocation2] sm:$0xff]  ;;  %s116_s23 = smov [#allocation5]  }
  0x14   :  { %29 = vperm.xlu0 %63, %v24_v1   ;;  %s50_s0 = sshll.u32 %s116_s23, 4  ;;  %s51_s0 = int_to_ptr.vmem [resolvable:$true] %s50_s0 }
  0x15   :  { %s87_s1 = scalar_lea.vmem %s51_s0, 256  ;;  %p92_p9 = scmp.lt.s32.totalorder %s51_s0, %s51_s0 }
  0x16   :  { %p88_p8 = scmp.ne.s32.totalorder %s51_s0, %s87_s1  ;;  %p93_p10 = scmp.lt.s32.totalorder %s87_s1, %s87_s1 }
  0x18   :  { %64 = vset.pattern.permute.xlu0 %v115_v2  ;;  %p94_p11 = por %p93_p10, %p92_p9 }
  0x19   :  { %35 = vperm.xlu0 %64, %v24_v1  }
  0x1a   :  { %p95_p12 = pnand %p94_p11, %p88_p8 }
  0x93   :  { %v30_v3 = vpop.permute.xlu0 %29 }
  0x94   :  { %v32_v6 = vmul.f32 %v30_v3, %v25_v4  ;;  %v33_v7 = vmul.f32 %v30_v3, %v26_v5 }
  0x98   :  { %v36_v8 = vpop.permute.xlu0 %35 }
  0x99   :  { %v38_v9 = vadd.f32 %v36_v8, %v32_v6  ;;  %v39_v10 = vadd.f32 %v36_v8, %v33_v7 }
  0x9b   :  { %v40_v11 = vmax.f32 %v38_v9, 0.0  ;;  %v41_v12 = vmax.f32 %v39_v10, 0.0 }
  0x9d   :  { %42 = vst [vmem:[#allocation5] sm:$0xff] %v40_v11  ;;  %43 = vst [vmem:[#allocation5 + $0x8] sm:$0xff] %v41_v12 }
  0x9e   :  { %98 = shalt.err (!%p95_p12)
}
  0x9f   :  { %s99_s26 = scalar_lea.hbm %s161_s2, 256 }
  0xa0   :  { %p100_p13 = scmp.ne.s32.totalorder %s161_s2, %s99_s26  ;;  %p103_p0 = scmp.lt.u32.totalorder %s99_s26, %s161_s2 }
  0xa2   :  { %p105_p1 = pnand %p103_p0, %p100_p13 }
  0xa4   :  { %108 = shalt.err (!%p105_p1)
}
  0xa5   :  { %53 = dma.vmem_to_hbm [thread:$0]  %s51_s0, 256, %s161_s2, [#allocation4]  }
  0xa6   :  { %111 = dma.done.wait [#allocation4], 256  }
  0xa7   :  { %112 = vsyncadd [#allocation4], 4294967040 }
  0xa8   :  { %57 = vsyncpa [#allocation3], 1 }
  0xa9   :  { %58 = vsyncpa [#allocation4], 1 }

</bundles_post_ra>
